<compile_context>
chip_gen: v7x
topology: tpu7x:2x2x1
jax: 0.10.0
libtpu: 0.0.40
codegen_flags: <defaults>
</compile_context>

<pallas_src>
import functools

import jax
import jax.numpy as jnp
from jax.experimental import pallas as pl
from jax.experimental.pallas import tpu as pltpu


def _dsc_loss_kernel(pred_ref, lab_ref, ce_ref, dice_ref,
                     ce_acc, inter_acc, psum_acc, tsum_acc,
                     *, s_total, tile_pixels, smooth):
    # pred_ref: (C, TS) logits; lab_ref: (1, TS) int32 labels.
    # ce_ref:   (1, 1)  per-batch CE sum (written at the last spatial tile).
    # dice_ref: (C, 1)  per-(batch, class) dice (written at the last tile).
    s = pl.program_id(1)
    last_s = pl.num_programs(1) - 1
    ragged = (s_total % tile_pixels) != 0      # static: only pay masking if needed

    # ---- zero per-batch accumulators at the first spatial tile --------------
    @pl.when(s == 0)
    def _():
        ce_acc[...] = jnp.zeros_like(ce_acc)
        inter_acc[...] = jnp.zeros_like(inter_acc)
        psum_acc[...] = jnp.zeros_like(psum_acc)
        tsum_acc[...] = jnp.zeros_like(tsum_acc)

    x = pred_ref[...].astype(jnp.float32)      # (C, TS)
    lab = lab_ref[...]                         # (1, TS) int32
    C, TS = x.shape

    if ragged:
        # Last tile may contain HBM garbage past S: sanitize logits and labels.
        lane = jax.lax.broadcasted_iota(jnp.int32, (1, TS), 1)
        valid = (s * TS + lane) < s_total      # (1, TS) bool
        x = jnp.where(valid, x, 0.0)
        lab = jnp.where(valid, lab, -1)

    # ---- softmax / log-denominator over the class (sublane) axis ------------
    m = jnp.max(x, axis=0, keepdims=True)      # (1, TS)
    xm = x - m
    e = jnp.exp(xm)                            # EUP
    den = jnp.sum(e, axis=0, keepdims=True)    # (1, TS), >= 1
    inv = pl.reciprocal(den)                   # exact (approx recip not needed)
    logden = jnp.log(den)                      # EUP
    if ragged:
        inv = jnp.where(valid, inv, 0.0)       # mask once at (1, TS) width
        logden = jnp.where(valid, logden, 0.0)

    p = e * inv                                # softmax probs (0 on padding)

    # Class index as a narrow (C,1) iota; the compare broadcasts it to (C,TS).
    cls = jax.lax.broadcasted_iota(jnp.int32, (C, 1), 0)
    match = cls == lab                         # (C, TS) bool; False on padding

    # ---- accumulate per-batch partial sums in f32 scratch --------------------
    # CE over valid pixels: sum(logden) - sum(xm at the true class).
    ce_acc[...] += jnp.sum(logden) - jnp.sum(jnp.where(match, xm, 0.0))
    inter_acc[...] += jnp.sum(jnp.where(match, p, 0.0), axis=1, keepdims=True)
    psum_acc[...] += jnp.sum(p, axis=1, keepdims=True)
    tsum_acc[...] += jnp.sum(match.astype(jnp.float32), axis=1, keepdims=True)

    # ---- last spatial tile: emit this batch element's partials --------------
    @pl.when(s == last_s)
    def _():
        sm = jnp.float32(smooth)
        dice_ref[...] = (2.0 * inter_acc[...] + sm) / (
            psum_acc[...] + tsum_acc[...] + sm)        # (C, 1)
        ce_ref[...] = ce_acc[...]                      # (1, 1)


def dsc_loss(pred_nchw, label, *, num_classes, inter_weight=0.5,
             tile_pixels=None, smooth=1e-5):
    """pred_nchw: (B, C, H, W) float (f32 or bf16) logits; label: (B, H, W) ints."""
    B, C, H, W = pred_nchw.shape
    assert C == num_classes
    S = H * W

    # ---- lane tile: multiple of 128, ~4 MiB of (sublane-padded) logits ------
    c_pad = ((C + 7) // 8) * 8
    if tile_pixels is None:
        target_bytes = 4 << 20                         # review: 2-4 MiB blocks
        tile_pixels = max(128, (target_bytes // (c_pad * 4)) // 128 * 128)
    s_ceil = ((S + 127) // 128) * 128
    tile_pixels = min(tile_pixels, s_ceil)
    n_tiles = pl.cdiv(S, tile_pixels)                  # ragged tail handled in-kernel

    # ---- glue: flatten spatial only -- NO padding, NO dtype upcast ----------
    pred = pred_nchw.reshape(B, C, S)
    lab = label.reshape(B, 1, S).astype(jnp.int32)
    # NOTE: int8 labels (review, v5e HBM traffic) deliberately not used: a
    # single-sublane sub-word ref is a lowering risk; int32 is safe everywhere.

    kernel = functools.partial(_dsc_loss_kernel, s_total=S,
                               tile_pixels=tile_pixels, smooth=smooth)

    cost = pl.CostEstimate(
        flops=12 * B * C * n_tiles * tile_pixels,
        transcendentals=B * n_tiles * tile_pixels * (C + 2),
        bytes_accessed=int(pred.size) * int(pred.dtype.itemsize)
                       + int(lab.size) * 4 + B * (C + 1) * 4)

    ce_parts, dice_parts = pl.pallas_call(
        kernel,
        out_shape=(jax.ShapeDtypeStruct((B, 1, 1), jnp.float32),
                   jax.ShapeDtypeStruct((B, C, 1), jnp.float32)),
        grid=(B, n_tiles),
        in_specs=[
            pl.BlockSpec((None, C, tile_pixels), lambda b, s: (b, 0, s)),
            pl.BlockSpec((None, 1, tile_pixels), lambda b, s: (b, 0, s)),
        ],
        out_specs=(
            pl.BlockSpec((None, 1, 1), lambda b, s: (b, 0, 0)),
            pl.BlockSpec((None, C, 1), lambda b, s: (b, 0, 0)),
        ),
        scratch_shapes=[pltpu.VMEM((1, 1), jnp.float32),   # ce_acc
                        pltpu.VMEM((C, 1), jnp.float32),   # inter_acc
                        pltpu.VMEM((C, 1), jnp.float32),   # psum_acc
                        pltpu.VMEM((C, 1), jnp.float32)],  # tsum_acc
        compiler_params=pltpu.CompilerParams(
            # Batch axis independent per iteration -> megacore-shardable on v7x;
            # spatial axis carries per-batch accumulators -> sequential.
            dimension_semantics=("parallel", "arbitrary"),
            # ~24 MiB worst-case double-buffered footprint; 32 MiB is <= physical
            # VMEM on every generation and > v5e's 16 MiB default scoped limit.
            vmem_limit_bytes=32 << 20),
        cost_estimate=cost,
    )(pred, lab)

    # ---- tiny final reduction in JAX (enables the parallel batch axis) ------
    cel = jnp.sum(ce_parts) / jnp.float32(B * S)
    dice = dice_parts[:, :, 0]                              # (B, C)
    dicel = jnp.mean(1.0 - jnp.sum(dice, axis=0) / jnp.float32(B))
    w = jnp.float32(inter_weight)
    return cel * (1.0 - w) + dicel * w


def _reference(pred_nchw, label, num_classes, inter_weight=0.5):
    """Pure-JAX reference mirroring the PyTorch module (for self-check)."""
    B, C, H, W = pred_nchw.shape
    x = pred_nchw.astype(jnp.float32)
    logp = jax.nn.log_softmax(x, axis=1)
    oh = jnp.transpose(jax.nn.one_hot(label, num_classes, dtype=jnp.float32),
                       (0, 3, 1, 2))
    cel = -jnp.mean(jnp.sum(oh * logp, axis=1))
    p = jax.nn.softmax(x, axis=1).reshape(B, C, -1)
    t = oh.reshape(B, C, -1)
    smooth = 1e-5
    dice = (2.0 * jnp.sum(p * t, axis=2) + smooth) / (
        jnp.sum(p, axis=2) + jnp.sum(t, axis=2) + smooth)
    dicel = jnp.mean(1.0 - jnp.sum(dice, axis=0) / B)
    return cel * (1 - inter_weight) + dicel * inter_weight


if __name__ == "__main__":
    key = jax.random.PRNGKey(0)
    kp, kl, kp2, kl2, kp3, kl3 = jax.random.split(key, 6)

    # 1) Main check: standard small shape, f32 logits.
    B, C, H, W = 2, 4, 16, 16
    pred = jax.random.normal(kp, (B, C, H, W), dtype=jnp.float32)
    label = jax.random.randint(kl, (B, H, W), 0, C, dtype=jnp.int32)
    out = jax.block_until_ready(dsc_loss(pred, label, num_classes=C))
    ref = _reference(pred, label, C)
    assert jnp.allclose(out, ref, atol=1e-3, rtol=1e-3), (out, ref)

    # 2) Ragged spatial size (S = 117): exercises the in-kernel validity mask
    #    with NO wrapper-side padding of the logits.
    B2, C2, H2, W2 = 2, 3, 9, 13
    pred2 = jax.random.normal(kp2, (B2, C2, H2, W2), dtype=jnp.float32)
    label2 = jax.random.randint(kl2, (B2, H2, W2), 0, C2, dtype=jnp.int32)
    out2 = jax.block_until_ready(dsc_loss(pred2, label2, num_classes=C2))
    ref2 = _reference(pred2, label2, C2)
    assert jnp.allclose(out2, ref2, atol=1e-3, rtol=1e-3), (out2, ref2)

    # 3) Multi-tile accumulation + ragged last tile (forced small tile size).
    B3, C3, H3, W3 = 2, 4, 17, 31
    pred3 = jax.random.normal(kp3, (B3, C3, H3, W3), dtype=jnp.float32)
    label3 = jax.random.randint(kl3, (B3, H3, W3), 0, C3, dtype=jnp.int32)
    out3 = jax.block_until_ready(
        dsc_loss(pred3, label3, num_classes=C3, tile_pixels=128))
    ref3 = _reference(pred3, label3, C3)
    assert jnp.allclose(out3, ref3, atol=1e-3, rtol=1e-3), (out3, ref3)

    # 4) bf16 logits passed through without any JAX-level upcast.
    pred_bf16 = pred.astype(jnp.bfloat16)
    out4 = jax.block_until_ready(dsc_loss(pred_bf16, label, num_classes=C))
    ref4 = _reference(pred_bf16, label, C)
    assert jnp.allclose(out4, ref4, atol=2e-3, rtol=2e-3), (out4, ref4)

    print("KERNEL_OK")
</pallas_src>

<mosaic_0001>
module attributes {stable_mosaic.version = 11 : i64} {
  func.func @_dsc_loss_kernel(%arg0: i32, %arg1: i32, %arg2: memref<1x4x256xf32, #tpu.memory_space<vmem>>, %arg3: memref<1x1x256xi32, #tpu.memory_space<vmem>>, %arg4: memref<1x1x1xf32, #tpu.memory_space<vmem>>, %arg5: memref<1x4x1xf32, #tpu.memory_space<vmem>>, %arg6: memref<1x1xf32, #tpu.memory_space<vmem>>, %arg7: memref<4x1xf32, #tpu.memory_space<vmem>>, %arg8: memref<4x1xf32, #tpu.memory_space<vmem>>, %arg9: memref<4x1xf32, #tpu.memory_space<vmem>>) attributes {dimension_semantics = [#tpu.dimension_semantics<parallel>, #tpu.dimension_semantics<arbitrary>], iteration_bounds = array<i64: 2, 1>, scalar_prefetch = 0 : i64, scratch_operands = 4 : i64, tpu.core_type = #tpu.core_type<tc>, window_params = [{transform_indices = @transform_0, window_bounds = array<i64: 1, 4, 256>}, {transform_indices = @transform_1, window_bounds = array<i64: 1, 1, 256>}, {transform_indices = @transform_2, window_bounds = array<i64: 1, 1, 1>}, {transform_indices = @transform_3, window_bounds = array<i64: 1, 4, 1>}]} {
    %c0_i32 = arith.constant 0 : i32
    %0 = arith.cmpi eq, %arg1, %c0_i32 : i32
    %1 = arith.extui %0 : i1 to i32
    %c0_i32_0 = arith.constant 0 : i32
    %2 = arith.cmpi ne, %1, %c0_i32_0 : i32
    scf.if %2 {
      %cst_32 = arith.constant 0.000000e+00 : f32
      %59 = vector.broadcast %cst_32 : f32 to vector<1x1xf32>
      %c0_33 = arith.constant 0 : index
      %c0_34 = arith.constant 0 : index
      %60 = vector.load %arg6[%c0_33, %c0_34] : memref<1x1xf32, #tpu.memory_space<vmem>>, vector<1x1xf32>
      tpu.vector_store %arg6[%c0_33, %c0_34], %59 {strides = array<i32>} : memref<1x1xf32, #tpu.memory_space<vmem>>, vector<1x1xf32>,
      %cst_35 = arith.constant 0.000000e+00 : f32
      %61 = vector.broadcast %cst_35 : f32 to vector<4x1xf32>
      %c0_36 = arith.constant 0 : index
      %c0_37 = arith.constant 0 : index
      %62 = vector.load %arg7[%c0_36, %c0_37] : memref<4x1xf32, #tpu.memory_space<vmem>>, vector<4x1xf32>
      tpu.vector_store %arg7[%c0_36, %c0_37], %61 {strides = array<i32>} : memref<4x1xf32, #tpu.memory_space<vmem>>, vector<4x1xf32>,
      %cst_38 = arith.constant 0.000000e+00 : f32
      %63 = vector.broadcast %cst_38 : f32 to vector<4x1xf32>
      %c0_39 = arith.constant 0 : index
      %c0_40 = arith.constant 0 : index
      %64 = vector.load %arg8[%c0_39, %c0_40] : memref<4x1xf32, #tpu.memory_space<vmem>>, vector<4x1xf32>
      tpu.vector_store %arg8[%c0_39, %c0_40], %63 {strides = array<i32>} : memref<4x1xf32, #tpu.memory_space<vmem>>, vector<4x1xf32>,
      %cst_41 = arith.constant 0.000000e+00 : f32
      %65 = vector.broadcast %cst_41 : f32 to vector<4x1xf32>
      %c0_42 = arith.constant 0 : index
      %c0_43 = arith.constant 0 : index
      %66 = vector.load %arg9[%c0_42, %c0_43] : memref<4x1xf32, #tpu.memory_space<vmem>>, vector<4x1xf32>
      tpu.vector_store %arg9[%c0_42, %c0_43], %65 {strides = array<i32>} : memref<4x1xf32, #tpu.memory_space<vmem>>, vector<4x1xf32>,
    } else {
    }
    %c0 = arith.constant 0 : index
    %c0_1 = arith.constant 0 : index
    %c0_2 = arith.constant 0 : index
    %3 = vector.load %arg2[%c0, %c0_1, %c0_2] : memref<1x4x256xf32, #tpu.memory_space<vmem>>, vector<1x4x256xf32>
    %4 = vector.shape_cast %3 : vector<1x4x256xf32> to vector<4x256xf32>
    %c0_3 = arith.constant 0 : index
    %c0_4 = arith.constant 0 : index
    %c0_5 = arith.constant 0 : index
    %5 = vector.load %arg3[%c0_3, %c0_4, %c0_5] : memref<1x1x256xi32, #tpu.memory_space<vmem>>, vector<1x1x256xi32>
    %6 = vector.shape_cast %5 : vector<1x1x256xi32> to vector<1x256xi32>
    %cst = arith.constant dense<0xFF800000> : vector<256xf32>
    %7 = vector.multi_reduction <maximumf>, %4, %cst [0] : vector<4x256xf32> to vector<256xf32>
    %8 = vector.shape_cast %7 : vector<256xf32> to vector<1x256xf32>
    %9 = vector.broadcast %8 : vector<1x256xf32> to vector<4x256xf32>
    %10 = arith.subf %4, %9 : vector<4x256xf32>
    %11 = math.exp %10 : vector<4x256xf32>
    %cst_6 = arith.constant dense<0.000000e+00> : vector<256xf32>
    %12 = vector.multi_reduction <add>, %11, %cst_6 [0] : vector<4x256xf32> to vector<256xf32>
    %13 = vector.shape_cast %12 : vector<256xf32> to vector<1x256xf32>
    %14 = tpu.reciprocal %13 : vector<1x256xf32> -> vector<1x256xf32>
    %15 = math.log %13 : vector<1x256xf32>
    %16 = vector.broadcast %14 : vector<1x256xf32> to vector<4x256xf32>
    %17 = arith.mulf %11, %16 : vector<4x256xf32>
    %18 = tpu.iota {dimensions = array<i32: 0>} : vector<4x1xi32>
    %19 = vector.broadcast %18 : vector<4x1xi32> to vector<4x256xi32>
    %20 = vector.broadcast %6 : vector<1x256xi32> to vector<4x256xi32>
    %21 = arith.cmpi eq, %19, %20 : vector<4x256xi32>
    %c0_7 = arith.constant 0 : index
    %c0_8 = arith.constant 0 : index
    %22 = vector.load %arg6[%c0_7, %c0_8] : memref<1x1xf32, #tpu.memory_space<vmem>>, vector<1x1xf32>
    %23 = vector.shape_cast %15 : vector<1x256xf32> to vector<1x1x256xf32>
    %cst_9 = arith.constant dense<0.000000e+00> : vector<1xf32>
    %24 = vector.multi_reduction <add>, %23, %cst_9 [1, 2] : vector<1x1x256xf32> to vector<1xf32>
    %25 = vector.shape_cast %24 : vector<1xf32> to vector<1x1x1xf32>
    %26 = vector.extract %25[0, 0, 0] : f32 from vector<1x1x1xf32>
    %cst_10 = arith.constant 0.000000e+00 : f32
    %27 = vector.broadcast %cst_10 : f32 to vector<4x256xf32>
    %28 = arith.select %21, %10, %27 : vector<4x256xi1>, vector<4x256xf32>
    %29 = vector.shape_cast %28 : vector<4x256xf32> to vector<1x4x256xf32>
    %cst_11 = arith.constant dense<0.000000e+00> : vector<1xf32>
    %30 = vector.multi_reduction <add>, %29, %cst_11 [1, 2] : vector<1x4x256xf32> to vector<1xf32>
    %31 = vector.shape_cast %30 : vector<1xf32> to vector<1x1x1xf32>
    %32 = vector.extract %31[0, 0, 0] : f32 from vector<1x1x1xf32>
    %33 = arith.subf %26, %32 : f32
    %34 = vector.broadcast %33 : f32 to vector<1x1xf32>
    %35 = arith.addf %22, %34 : vector<1x1xf32>
    %c0_12 = arith.constant 0 : index
    %c0_13 = arith.constant 0 : index
    %36 = vector.load %arg6[%c0_12, %c0_13] : memref<1x1xf32, #tpu.memory_space<vmem>>, vector<1x1xf32>
    tpu.vector_store %arg6[%c0_12, %c0_13], %35 {strides = array<i32>} : memref<1x1xf32, #tpu.memory_space<vmem>>, vector<1x1xf32>,
    %c0_14 = arith.constant 0 : index
    %c0_15 = arith.constant 0 : index
    %37 = vector.load %arg7[%c0_14, %c0_15] : memref<4x1xf32, #tpu.memory_space<vmem>>, vector<4x1xf32>
    %cst_16 = arith.constant 0.000000e+00 : f32
    %38 = vector.broadcast %cst_16 : f32 to vector<4x256xf32>
    %39 = arith.select %21, %17, %38 : vector<4x256xi1>, vector<4x256xf32>
    %cst_17 = arith.constant dense<0.000000e+00> : vector<4xf32>
    %40 = vector.multi_reduction <add>, %39, %cst_17 [1] : vector<4x256xf32> to vector<4xf32>
    %41 = vector.shape_cast %40 : vector<4xf32> to vector<4x1xf32>
    %42 = arith.addf %37, %41 : vector<4x1xf32>
    %c0_18 = arith.constant 0 : index
    %c0_19 = arith.constant 0 : index
    %43 = vector.load %arg7[%c0_18, %c0_19] : memref<4x1xf32, #tpu.memory_space<vmem>>, vector<4x1xf32>
    tpu.vector_store %arg7[%c0_18, %c0_19], %42 {strides = array<i32>} : memref<4x1xf32, #tpu.memory_space<vmem>>, vector<4x1xf32>,
    %c0_20 = arith.constant 0 : index
    %c0_21 = arith.constant 0 : index
    %44 = vector.load %arg8[%c0_20, %c0_21] : memref<4x1xf32, #tpu.memory_space<vmem>>, vector<4x1xf32>
    %cst_22 = arith.constant dense<0.000000e+00> : vector<4xf32>
    %45 = vector.multi_reduction <add>, %17, %cst_22 [1] : vector<4x256xf32> to vector<4xf32>
    %46 = vector.shape_cast %45 : vector<4xf32> to vector<4x1xf32>
    %47 = arith.addf %44, %46 : vector<4x1xf32>
    %c0_23 = arith.constant 0 : index
    %c0_24 = arith.constant 0 : index
    %48 = vector.load %arg8[%c0_23, %c0_24] : memref<4x1xf32, #tpu.memory_space<vmem>>, vector<4x1xf32>
    tpu.vector_store %arg8[%c0_23, %c0_24], %47 {strides = array<i32>} : memref<4x1xf32, #tpu.memory_space<vmem>>, vector<4x1xf32>,
    %c0_25 = arith.constant 0 : index
    %c0_26 = arith.constant 0 : index
    %49 = vector.load %arg9[%c0_25, %c0_26] : memref<4x1xf32, #tpu.memory_space<vmem>>, vector<4x1xf32>
    %50 = arith.extui %21 : vector<4x256xi1> to vector<4x256xi32>
    %51 = arith.sitofp %50 : vector<4x256xi32> to vector<4x256xf32>
    %cst_27 = arith.constant dense<0.000000e+00> : vector<4xf32>
    %52 = vector.multi_reduction <add>, %51, %cst_27 [1] : vector<4x256xf32> to vector<4xf32>
    %53 = vector.shape_cast %52 : vector<4xf32> to vector<4x1xf32>
    %54 = arith.addf %49, %53 : vector<4x1xf32>
    %c0_28 = arith.constant 0 : index
    %c0_29 = arith.constant 0 : index
    %55 = vector.load %arg9[%c0_28, %c0_29] : memref<4x1xf32, #tpu.memory_space<vmem>>, vector<4x1xf32>
    tpu.vector_store %arg9[%c0_28, %c0_29], %54 {strides = array<i32>} : memref<4x1xf32, #tpu.memory_space<vmem>>, vector<4x1xf32>,
    %c0_i32_30 = arith.constant 0 : i32
    %56 = arith.cmpi eq, %arg1, %c0_i32_30 : i32
    %57 = arith.extui %56 : i1 to i32
    %c0_i32_31 = arith.constant 0 : i32
    %58 = arith.cmpi ne, %57, %c0_i32_31 : i32
    scf.if %58 {
      %c0_32 = arith.constant 0 : index
      %c0_33 = arith.constant 0 : index
      %59 = vector.load %arg7[%c0_32, %c0_33] : memref<4x1xf32, #tpu.memory_space<vmem>>, vector<4x1xf32>
      %cst_34 = arith.constant 2.000000e+00 : f32
      %60 = vector.broadcast %cst_34 : f32 to vector<4x1xf32>
      %61 = arith.mulf %60, %59 : vector<4x1xf32>
      %cst_35 = arith.constant 9.99999974E-6 : f32
      %62 = vector.broadcast %cst_35 : f32 to vector<4x1xf32>
      %63 = arith.addf %61, %62 : vector<4x1xf32>
      %c0_36 = arith.constant 0 : index
      %c0_37 = arith.constant 0 : index
      %64 = vector.load %arg8[%c0_36, %c0_37] : memref<4x1xf32, #tpu.memory_space<vmem>>, vector<4x1xf32>
      %c0_38 = arith.constant 0 : index
      %c0_39 = arith.constant 0 : index
      %65 = vector.load %arg9[%c0_38, %c0_39] : memref<4x1xf32, #tpu.memory_space<vmem>>, vector<4x1xf32>
      %66 = arith.addf %64, %65 : vector<4x1xf32>
      %cst_40 = arith.constant 9.99999974E-6 : f32
      %67 = vector.broadcast %cst_40 : f32 to vector<4x1xf32>
      %68 = arith.addf %66, %67 : vector<4x1xf32>
      %69 = arith.divf %63, %68 : vector<4x1xf32>
      %c0_41 = arith.constant 0 : index
      %c0_42 = arith.constant 0 : index
      %c0_43 = arith.constant 0 : index
      %70 = vector.load %arg5[%c0_41, %c0_42, %c0_43] : memref<1x4x1xf32, #tpu.memory_space<vmem>>, vector<1x4x1xf32>
      %71 = vector.shape_cast %70 : vector<1x4x1xf32> to vector<4x1xf32>
      %72 = vector.shape_cast %69 : vector<4x1xf32> to vector<1x4x1xf32>
      tpu.vector_store %arg5[%c0_41, %c0_42, %c0_43], %72 {strides = array<i32>} : memref<1x4x1xf32, #tpu.memory_space<vmem>>, vector<1x4x1xf32>,
      %c0_44 = arith.constant 0 : index
      %c0_45 = arith.constant 0 : index
      %73 = vector.load %arg6[%c0_44, %c0_45] : memref<1x1xf32, #tpu.memory_space<vmem>>, vector<1x1xf32>
      %c0_46 = arith.constant 0 : index
      %c0_47 = arith.constant 0 : index
      %c0_48 = arith.constant 0 : index
      %74 = vector.load %arg4[%c0_46, %c0_47, %c0_48] : memref<1x1x1xf32, #tpu.memory_space<vmem>>, vector<1x1x1xf32>
      %75 = vector.shape_cast %74 : vector<1x1x1xf32> to vector<1x1xf32>
      %76 = vector.shape_cast %73 : vector<1x1xf32> to vector<1x1x1xf32>
      tpu.vector_store %arg4[%c0_46, %c0_47, %c0_48], %76 {strides = array<i32>} : memref<1x1x1xf32, #tpu.memory_space<vmem>>, vector<1x1x1xf32>,
    } else {
    }
    return
  }
  func.func @transform_0(%arg0: i32, %arg1: i32) -> (i32, i32, i32) {
    %c0_i32 = arith.constant 0 : i32
    %c0_i32_0 = arith.constant 0 : i32
    return %arg0, %c0_i32, %arg1 : i32, i32, i32
  }
  func.func @transform_1(%arg0: i32, %arg1: i32) -> (i32, i32, i32) {
    %c0_i32 = arith.constant 0 : i32
    %c0_i32_0 = arith.constant 0 : i32
    return %arg0, %c0_i32, %arg1 : i32, i32, i32
  }
  func.func @transform_2(%arg0: i32, %arg1: i32) -> (i32, i32, i32) {
    %c0_i32 = arith.constant 0 : i32
    %c0_i32_0 = arith.constant 0 : i32
    %c0_i32_1 = arith.constant 0 : i32
    return %arg0, %c0_i32, %c0_i32_0 : i32, i32, i32
  }
  func.func @transform_3(%arg0: i32, %arg1: i32) -> (i32, i32, i32) {
    %c0_i32 = arith.constant 0 : i32
    %c0_i32_0 = arith.constant 0 : i32
    %c0_i32_1 = arith.constant 0 : i32
    return %arg0, %c0_i32, %c0_i32_0 : i32, i32, i32
  }
}

</mosaic_0001>

<bundles_post_ra>
// kernel: tpu_custom_call.1
= control target key start
LH: loop header
LB: loop body
LE: loop exit
PB: predicated region body
PF: predicated region fallthrough
CT: control target
= control target key end

     0   :  { %9 = vsyncpa [#allocation7], 0  ;;  %s982_s0 = inlined_call_operand.hbm [shape: f32[2,4,256], index: 0, kind: input, shape index: {}]   ;;  %s983_s1 = inlined_call_operand.hbm [shape: s32[2,1,256], index: 1, kind: input, shape index: {}]   ;;  %s984_s2 = inlined_call_operand.vmem [shape: f32[2,1,1], index: 2, kind: output, shape index: {0}]   ;;  %s985_s3 = inlined_call_operand.vmem [shape: f32[2,4,1], index: 3, kind: output, shape index: {1}]  }
   0x1   :  { %11 = vsyncpa [#allocation7 + $0x1], 0 }
   0x2   :  { %12 = vsyncpa [#allocation9], 0 }
   0x3   :  { %14 = vsyncpa [#allocation9 + $0x1], 0  ;;  %s782_s12 = smov 0   ;;  %s784_s13 = smov 0  }
   0x4   :  { %s786_s14 = smov 0   ;;  %s788_s15 = smov 0  }
   0x5   :  { %s790_s16 = smov 0   ;;  %s792_s17 = smov 0  }
   0x6 LB: > { %s545_s18 = sadd.s32 4294967295, %s757_s17   ;;  %s32_s19 = sadd.s32 1, %s753_s16  ;;  %s757_s17 = sphi %s792_s17, %s20_s17   ;;  %s753_s16 = sphi %s790_s16, %s999_s16   ;;  %s749_s15 = sphi %s788_s15, %s998_s15   ;;  %s745_s14 = sphi %s786_s14, %s997_s14   ;;  %s741_s13 = sphi %s784_s13, %s996_s13   ;;  %s737_s12 = sphi %s782_s12, %s995_s12  }
   0x7   : > { %p34_p0 = scmp.ge.s32.totalorder %s32_s19, 2  ;;  %s41_s20 = sadd.s32 1, %s745_s14 }
   0x8   : > { %p48_p1 = scmp.ne.s32.totalorder %s745_s14, %s741_s13  ;;  %p49_p2 = scmp.eq.s32.totalorder %s757_s17, 0 }
   0x9   : > { %s1001_s19 = smov (%p34_p0, %s32_s19), 0  ;;  %p54_p4 = scmp.ne.s32.totalorder %s741_s13, %s737_s12 }
   0xa   : > { %p818_p3 = por %p49_p2, %p48_p1  ;;  %s36_s22 = ssub.s32 %s753_s16, %s1001_s19 }
   0xb   : > { %p55_p5 = scmp.eq.s32.totalorder %s545_s18, 0  ;;  %p39_p6 = scmp.eq.s32.totalorder %s36_s22, 0 }
   0xc   : > { %p580_p8 = scmp.lt.s32.totalorder %s757_s17, 2  ;;  %s834_s25 = sand.u32 1, %s745_s14  }
   0xd   : > { %p825_p7 = por %p55_p5, %p54_p4  ;;  %s563_s26 = sshll.u32 %s753_s16, 7 }
   0xe   : > { %s831_s24 = scalar_select %p39_p6, %s745_s14, %s41_s20  }
   0xf   : > { %s988_s23 = scalar_select %p825_p7, 1, 0 }
  0x10   : > { %s549_s27 = sshll.u32 %s834_s25, 3  ;;  %s841_s30 = scalar_lea.hbm %s982_s0, %s563_s26 }
  0x11   : > { %s162_s4 = scalar_lea.vmem [#allocation6], %s549_s27  ;;  %p845_p9 = pnand %p580_p8, %p818_p3 }
  0x12   : > { %s172_s5 = sshll.u32 %s162_s4, 4  ;;  %s159_s7 = scalar_lea.sflag [#allocation7], %s834_s25  ;;  %s849_s5 = int_to_ptr.vmem [resolvable:$true] %s172_s5 }
  0x13   : > { %s643_s8 = scalar_lea.hbm %s841_s30, 128  ;;  %p645_p13 = pneg %p845_p9 }
  0x14   : > { %p644_p12 = scmp.ne.s32.totalorder %s841_s30, %s643_s8  ;;  %s648_s11 = scalar_lea.hbm %s982_s0, 256 }
  0x15   : > { %p649_p2 = scmp.lt.u32.totalorder %s841_s30, %s982_s0  ;;  %p650_p3 = scmp.lt.u32.totalorder %s648_s11, %s643_s8 }
  0x16   : > { %p646_p0 = pnand %p645_p13, %p644_p12  ;;  %p652_p5 = scmp.lt.u32.totalorder %s643_s8, %s841_s30 }
  0x17   : > { %p651_p4 = por %p650_p3, %p649_p2 }
  0x18   : > { %p647_p1 = pneg %p646_p0 }
  0x19   : > { %p653_p6 = por %p652_p5, %p651_p4 }
  0x1b   : > { %p654_p8 = pnand %p653_p6, %p647_p1 }
  0x1d   : > { %657 = shalt.err (!%p654_p8)
}
  0x1e   : > { %s658_s20 = scalar_lea.vmem %s849_s5, 128  ;;  %s759_s21 = smov [#allocation6]  }
  0x1f   : > { %p659_p12 = scmp.ne.s32.totalorder %s849_s5, %s658_s20  ;;  %s663_s22 = sshll.u32 %s759_s21, 4  ;;  %s664_s22 = int_to_ptr.vmem [resolvable:$false] %s663_s22 }
  0x20   : > { %s665_s26 = scalar_lea.vmem %s664_s22, 256  ;;  %p666_p11 = scmp.lt.s32.totalorder %s849_s5, %s664_s22 }
  0x21   : > { %p661_p0 = pnand %p659_p12, %p645_p13  ;;  %p667_p2 = scmp.lt.s32.totalorder %s665_s26, %s658_s20 }
  0x23   : > { %p662_p10 = pneg %p661_p0  ;;  %p668_p3 = por %p667_p2, %p666_p11 }
  0x25   : > { %p669_p4 = pnand %p668_p3, %p662_p10 }
  0x27   : > { %672 = shalt.err (!%p669_p4)
}
  0x28   : > { %576 = dma.hbm_to_vmem [thread:$0]  (!%p845_p9), %s841_s30, 128, %s849_s5, %s159_s7  }
  0x29   : > { %p990_p1 = scmp.lt.s32.totalorder %s757_s17, 3  ;;  %p991_p5 = scmp.ge.s32.totalorder %s757_s17, 1 }
  0x2a   : > { %s552_s28 = sshll.u32 %s834_s25, 1  ;;  %s564_s29 = sshll.u32 %s753_s16, 5 }
  0x2b   : > { %p883_p6 = pnand %p991_p5, %p990_p1  ;;  %s892_s9 = scalar_lea.hbm %s983_s1, %s564_s29 }
  0x2c   : > { %s183_s10 = scalar_lea.vmem [#allocation8], %s552_s28  ;;  %s180_s30 = scalar_lea.sflag [#allocation9], %s834_s25 }
  0x2d   : > { %s992_s27 = scalar_select %p883_p6, 1, 0 }
  0x2e   : > { %s193_s11 = sshll.u32 %s183_s10, 4  ;;  %s673_s5 = scalar_lea.hbm %s892_s9, 32  ;;  %s194_s11 = int_to_ptr.vmem [resolvable:$true] %s193_s11 }
  0x2f   : > { %p674_p10 = scmp.ne.s32.totalorder %s892_s9, %s673_s5  ;;  %s678_s18 = scalar_lea.hbm %s983_s1, 64 }
  0x30   : > { %p679_p12 = scmp.lt.u32.totalorder %s892_s9, %s983_s1  ;;  %p680_p0 = scmp.lt.u32.totalorder %s678_s18, %s673_s5 }
  0x31   : > { %p676_p11 = pnand %p674_p10, %p645_p13  ;;  %p682_p3 = scmp.lt.u32.totalorder %s673_s5, %s892_s9 }
  0x32   : > { %p681_p2 = por %p680_p0, %p679_p12 }
  0x33   : > { %p677_p8 = pneg %p676_p11 }
  0x34   : > { %p683_p4 = por %p682_p3, %p681_p2 }
  0x36   : > { %p684_p1 = pnand %p683_p4, %p677_p8 }
  0x38   : > { %687 = shalt.err (!%p684_p1)
}
  0x39   : > { %s688_s25 = scalar_lea.vmem %s194_s11, 32  ;;  %s760_s22 = smov [#allocation8]  }
  0x3a   : > { %p689_p5 = scmp.ne.s32.totalorder %s194_s11, %s688_s25  ;;  %s693_s26 = sshll.u32 %s760_s22, 4  ;;  %s694_s26 = int_to_ptr.vmem [resolvable:$false] %s693_s26 }
  0x3b   : > { %s695_s28 = scalar_lea.vmem %s694_s26, 64  ;;  %p696_p7 = scmp.lt.s32.totalorder %s194_s11, %s694_s26 }
  0x3c   : > { %p691_p10 = pnand %p689_p5, %p645_p13  ;;  %p697_p6 = scmp.lt.s32.totalorder %s695_s28, %s688_s25 }
  0x3e   : > { %p692_p11 = pneg %p691_p10  ;;  %p698_p0 = por %p697_p6, %p696_p7 }
  0x40   : > { %p699_p12 = pnand %p698_p0, %p692_p11 }
  0x42   : > { %702 = shalt.err (!%p699_p12)
}
  0x43   : > { %579 = dma.hbm_to_vmem [thread:$0]  (!%p845_p9), %s892_s9, 32, %s194_s11, %s180_s30  }
  0x44   : > { %p993_p8 = scmp.ne.s32.totalorder %s992_s27, 0 }
  0x45   : > { %s204_s29 = sand.u32 (!%p993_p8), 1, %s741_s13   ;;  %p994_p13 = scmp.ne.s32.totalorder (!%p993_p8), %s988_s23, 0 }
  0x46   : > { %202 = sbr.rel (%p993_p8) target bundleno = 367 (0x16f), region = 28  ;;  %s556_s4 = sshll.u32 (!%p993_p8), %s204_s29, 3 }
  0x47   : > { %s205_s8 = scalar_lea.sflag (!%p993_p8), [#allocation7], %s204_s29  ;;  %s208_s10 = scalar_lea.vmem (!%p993_p8), [#allocation6], %s556_s4 }
  0x4d   : > { %728 = dma.done.wait (%p994_p13), %s205_s8, 128  }
  0x4e   : > { %730 = vsyncadd (%p994_p13), %s205_s8, 4294967168  ;;  %s557_s5 = sshll.u32 %s204_s29, 1  ;;  %s214_s7 = scalar_lea.sflag [#allocation9], %s204_s29 }
  0x4f   : > { %s921_s6 = scalar_lea.vmem [#allocation8], %s557_s5 }
  0x50   : > { %732 = dma.done.wait (%p994_p13), %s214_s7, 32  }
  0x51   : > { %734 = vsyncadd (%p994_p13), %s214_s7, 4294967264  ;;  %vm271_vm0 = vcmask 1043456   ;;  %v266_v0 = vld [vmem:[%s208_s10] sm:$0xff]  ;;  %v321_v28 = vlaneseq  ;;  %v267_v39 = vld [vmem:[%s921_s6] sm:$0x3]  ;;  %vm334_vm3 = vcmask 1040384  }
  0x52   : > { %v269_v1 = vcombine.high %v266_v0, %v266_v0  ;;  %v272_v2 = vsel %vm271_vm0, %v266_v0, -inf  ;;  %v761_v58 = vmov 0.0   ;;  %vm262_vm4 = vcmask 3072   ;;  %p249_p7 = scmp.lt.s32.totalorder %s749_s15, 1 }
  0x53   : > { %v273_v3 = vrot.slane %v272_v2, 4  ;;  %v322_v33 = vshrl.u32 %v321_v28, 7  ;;  %264 = vst.msk [vmem:[#allocation4] sm:$0xf] %vm262_vm4, %v761_v58  ;;  %263 = vst.msk [vmem:[#allocation3] sm:$0xf] %vm262_vm4, %v761_v58 }
  0x54   : > { %v279_v4 = vsel %vm271_vm0, %v269_v1, -inf  ;;  %265 = vst.msk [vmem:[#allocation5] sm:$0xf] %vm262_vm4, %v761_v58  ;;  %vm260_vm5 = vcmask 0   ;;  %s1003_s15 = smov (!%p249_p7, %s749_s15), 1 }
  0x55   : > { %v274_v5 = vmax.f32 %v272_v2, %v273_v3  ;;  %v280_v6 = vrot.slane %v279_v4, 4  ;;  %v325_v37 = vsub.s32 0, %v322_v33  ;;  %v329_v38 = vsub.s32 1, %v322_v33  ;;  %261 = vst.msk [vmem:[#allocation2] sm:$0x1] %vm260_vm5, %v761_v58  ;;  %s558_s23 = sshll.u32 %s1003_s15, 2  ;;  %s251_s25 = scalar_lea.vmem %s984_s2, %s1003_s15 }
  0x56   : > { %s255_s11 = scalar_lea.vmem %s985_s3, %s558_s23 }
  0x57   : > { %v275_v7 = vrot.slane %v274_v5, 2  ;;  %v281_v8 = vmax.f32 %v279_v4, %v280_v6  ;;  %v326_v40 = vrot.slane %v267_v39, %v325_v37  ;;  %v330_v41 = vrot.slane %v267_v39, %v329_v38 }
  0x59   : > { %v276_v9 = vmax.f32 %v274_v5, %v275_v7  ;;  %v282_v10 = vrot.slane %v281_v8, 2  ;;  %vm331_vm1 = vcmp.eq.s32.totalorder %v322_v33, %v326_v40  ;;  %vm332_vm2 = vcmp.eq.s32.totalorder %v322_v33, %v330_v41 }
  0x5a   : > { %v559_v59 = vsel %vm331_vm1, 1.0, %v761_v58  ;;  %v560_v60 = vsel %vm332_vm2, 1.0, %v761_v58 }
  0x5b   : > { %v277_v11 = vrot.slane %v276_v9, 1  ;;  %v283_v12 = vmax.f32 %v281_v8, %v282_v10  ;;  %v396_v3 = vsel %vm271_vm0, %v559_v59, 0.0  ;;  %v397_v4 = vsel %vm271_vm0, %v560_v60, 0.0 }
  0x5d   : > { %v278_v13 = vmax.f32 %v276_v9, %v277_v11  ;;  %v284_v14 = vrot.slane %v283_v12, 1  ;;  %v398_v9 = vadd.f32 %v397_v4, %v396_v3 }
  0x5f   : > { %v285_v15 = vmax.f32 %v283_v12, %v284_v14 }
  0x61   : > { %v288_v16 = vcombine.low %v278_v13, %v285_v15  ;;  %v383_v13 = vld [vmem:[#allocation4] sm:$0xf] }
  0x63   : > { %v290_v17 = vsub.f32 %v266_v0, %v288_v16 }
  0x65   : > { %v291_v18 = vmul.f32 1.442695, %v290_v17  ;;  %v348_v42 = vcombine.high %v290_v17, %v290_v17  ;;  %v350_v47 = vsel %vm331_vm1, %v290_v17, 0.0 }
  0x66   : > { %v352_v54 = vsel %vm271_vm0, %v350_v47, 0.0 }
  0x67   : > { %631 = vpow2.f32 %v291_v18  ;;  %v351_v48 = vsel %vm332_vm2, %v348_v42, 0.0  ;;  %v333_v42 = vld [vmem:[#allocation2] sm:$0x1] }
  0x68   : > { %v353_v55 = vsel %vm271_vm0, %v351_v48, 0.0 }
  0x69   : > { %v354_v61 = vadd.f32 %v353_v55, %v352_v54 }
  0x71   : > { %v632_v19 = vpop.eup %631 }
  0x72   : > { %v294_v20 = vcombine.high %v632_v19, %v632_v19  ;;  %v296_v21 = vsel %vm271_vm0, %v632_v19, 0.0 }
  0x73   : > { %v297_v22 = vrot.slane %v296_v21, 4 }
  0x74   : > { %v303_v23 = vsel %vm271_vm0, %v294_v20, 0.0 }
  0x75   : > { %v298_v24 = vadd.f32 %v297_v22, %v296_v21  ;;  %v304_v25 = vrot.slane %v303_v23, 4  ;;  %v391_v22 = vld [vmem:[#allocation5] sm:$0xf] }
  0x77   : > { %v299_v26 = vrot.slane %v298_v24, 2  ;;  %v305_v27 = vadd.f32 %v304_v25, %v303_v23 }
  0x79   : > { %v300_v29 = vadd.f32 %v299_v26, %v298_v24  ;;  %v306_v30 = vrot.slane %v305_v27, 2 }
  0x7b   : > { %v301_v31 = vrot.slane %v300_v29, 1  ;;  %v307_v32 = vadd.f32 %v306_v30, %v305_v27 }
  0x7d   : > { %v302_v34 = vadd.f32 %v301_v31, %v300_v29  ;;  %v308_v35 = vrot.slane %v307_v32, 1 }
  0x7f   : > { %v309_v36 = vadd.f32 %v308_v35, %v307_v32  ;;  %633 = vrcp.f32 %v302_v34 }
  0x80   : > { %635 = vlog2.f32 %v302_v34 }
  0x81   : > { %637 = vlog2.f32 %v309_v36 }
  0x82   : > { %639 = vrcp.f32 %v309_v36 }
  0x89   : > { %v634_v43 = vpop.eup %633 }
  0x8a   : > { %v636_v44 = vpop.eup %635 }
  0x8b   : > { %v638_v45 = vpop.eup %637  ;;  %v313_v46 = vmul.f32 0.6931472, %v636_v44 }
  0x8c   : > { %v640_v49 = vpop.eup %639  ;;  %v315_v50 = vmul.f32 0.6931472, %v638_v45 }
  0x8d   : > { %v335_v51 = vsel %vm334_vm3, %v313_v46, 0.0  ;;  %v318_v52 = vcombine.low %v634_v43, %v640_v49 }
  0x8e   : > { %v336_v53 = vsel %vm334_vm3, %v315_v50, 0.0 }
  0x8f   : > { %v337_v56 = vadd.f32 %v336_v53, %v335_v51  ;;  %v320_v57 = vmul.f32 %v632_v19, %v318_v52  ;;  %v369_v19 = vld [vmem:[#allocation3] sm:$0xf] }
  0x91   : > { %338 = vadd.xlane.f32.xlu0 %v337_v56  ;;  %v371_v62 = vcombine.high %v320_v57, %v320_v57  ;;  %v384_v63 = vsel %vm271_vm0, %v320_v57, 0.0  ;;  %v373_v0 = vsel %vm331_vm1, %v320_v57, 0.0 }
  0x92   : > { %v375_v1 = vsel %vm271_vm0, %v373_v0, 0.0 }
  0x93   : > { %v385_v2 = vsel %vm271_vm0, %v371_v62, 0.0  ;;  %v374_v5 = vsel %vm332_vm2, %v371_v62, 0.0 }
  0x94   : > { %v386_v6 = vadd.f32 %v385_v2, %v384_v63  ;;  %v376_v7 = vsel %vm271_vm0, %v374_v5, 0.0 }
  0x95   : > { %355 = vadd.xlane.f32.xlu0 %v354_v61  ;;  %v377_v8 = vadd.f32 %v376_v7, %v375_v1 }
  0x96   : > { %387 = vadd.xlane.f32.xlu1 %v386_v6 }
  0x99   : > { %378 = vadd.xlane.f32.xlu0 %v377_v8 }
  0x9a   : > { %399 = vadd.xlane.f32.xlu1 %v398_v9 }
 0x11e   : > { %v339_v10 = vpop.xlane.xlu0 %338 }
 0x11f   : > { %v340_v11 = vrot.slane %v339_v10, 4 }
 0x121   : > { %v341_v12 = vadd.f32 %v340_v11, %v339_v10 }
 0x122   : > { %v356_v14 = vpop.xlane.xlu0 %355 }
 0x123   : > { %v342_v15 = vrot.slane %v341_v12, 2  ;;  %v357_v16 = vrot.slane %v356_v14, 4  ;;  %v388_v17 = vpop.xlane.xlu1 %387 }
 0x124   : > { %v389_v18 = vadd.f32 %v388_v17, %v383_v13 }
 0x125   : > { %v358_v20 = vadd.f32 %v357_v16, %v356_v14  ;;  %v343_v21 = vadd.f32 %v342_v15, %v341_v12 }
 0x126   : > { %390 = vst.msk [vmem:[#allocation4] sm:$0xf] %vm262_vm4, %v389_v18  ;;  %v379_v23 = vpop.xlane.xlu0 %378 }
 0x127   : > { %v359_v24 = vrot.slane %v358_v20, 2  ;;  %v344_v25 = vrot.slane %v343_v21, 1  ;;  %v400_v26 = vpop.xlane.xlu1 %399  ;;  %v380_v27 = vadd.f32 %v379_v23, %v369_v19 }
 0x128   : > { %v401_v28 = vadd.f32 %v400_v26, %v391_v22 }
 0x129   : > { %v345_v29 = vadd.f32 %v344_v25, %v343_v21  ;;  %v360_v30 = vadd.f32 %v359_v24, %v358_v20  ;;  %382 = vst.msk [vmem:[#allocation3] sm:$0xf] %vm262_vm4, %v380_v27 }
 0x12a   : > { %402 = vst.msk [vmem:[#allocation5] sm:$0xf] %vm262_vm4, %v401_v28 }
 0x12b   : > { %565 = vpush %v345_v29  ;;  %v361_v31 = vrot.slane %v360_v30, 1 }
 0x12d   : > { %v362_v32 = vadd.f32 %v361_v31, %v360_v30  ;;  %v409_v33 = vld [vmem:[#allocation4] sm:$0xf] }
 0x12f   : > { %567 = vpush %v362_v32 }
 0x130   : > { %v406_v37 = vld [vmem:[#allocation3] sm:$0xf] }
 0x131   : > { %v410_v34 = vld [vmem:[#allocation5] sm:$0xf]  ;;  %v407_v38 = vmul.f32 2.0, %v406_v37 }
 0x132   : > { %v411_v35 = vadd.f32 %v410_v34, %v409_v33 }
 0x133   : > { %v408_v39 = vadd.f32 1e-05, %v407_v38 }
 0x134   : > { %v412_v36 = vadd.f32 1e-05, %v411_v35 }
 0x136   : > { %641 = vrcp.f32 %v412_v36 }
 0x140   : > { %v642_v40 = vpop.eup %641 }
 0x141   : > { %v414_v41 = vmul.f32 %v642_v40, %v408_v39 }
 0x143   : > { %415 = vst.msk [vmem:[%s255_s11] sm:$0xf] %vm262_vm4, %v414_v41 }
 0x15c   : > { %s566_s30 = spop %565 }
 0x160   : > { %s568_s12 = spop %567 }
 0x161   : > { %s364_s18 = ssub.f32 %s566_s30, %s568_s12 }
 0x163   : > { %v365_v43 = vstv %s364_s18 }
 0x164   : > { %v366_v44 = vadd.f32 %v365_v43, %v333_v42 }
 0x166   : > { %368 = vst.msk [vmem:[#allocation2] sm:$0x1] %vm260_vm5, %v366_v44 }
 0x16d   : > { %v416_v45 = vld [vmem:[#allocation2] sm:$0x1] }
 0x16e   : > { %417 = vst.msk [vmem:[%s251_s25] sm:$0x1] %vm260_vm5, %v416_v45 }
 0x16f PF: > { %s20_s17 = sadd.s32 1, %s757_s17   ;;  %s995_s12 = smov %s741_s13 }
 0x170   : > { %p17_p9 = scmp.ge.s32.totalorder %s20_s17, 4   ;;  %s996_s13 = smov %s745_s14 }
 0x171   : > { %s997_s14 = smov %s831_s24  ;;  %s998_s15 = smov %s753_s16 }
 0x172   : > { %s999_s16 = smov %s1001_s19  ;;  %19 = sbr.rel (!%p17_p9) target bundleno = 6 (0x6), region = 101 }
 0x179   :  { %449 = vsyncpa [#allocation7], 1 }
 0x17a   :  { %451 = vsyncpa [#allocation7 + $0x1], 1 }
 0x17b   :  { %452 = vsyncpa [#allocation9], 1 }
 0x17c   :  { %454 = vsyncpa [#allocation9 + $0x1], 1 }

</bundles_post_ra>
